<compile_context>
chip_gen: v5e
topology: v5e:2x2
jax: 0.10.0
libtpu: 0.0.40
codegen_flags: <defaults>
</compile_context>

<pallas_src>
import functools
import math

import jax
import jax.numpy as jnp
from jax import lax
from jax.experimental import pallas as pl
from jax.experimental.pallas import tpu as pltpu

_MIB = 1024 * 1024


# ---------------------------------------------------------------------------
# Hardware / budget helpers
# ---------------------------------------------------------------------------
def _vmem_capacity_bytes() -> int:
    """Physical VMEM per TensorCore; conservative fallback if the query fails."""
    try:
        return int(pltpu.get_tpu_info().vmem_capacity_bytes)
    except Exception:
        return 64 * _MIB  # v7x per-TC size; safe lower bound for v5e/v6e too.


def _compiler_params(needed_bytes, capacity, semantics):
    limit = int(min(capacity, max(needed_bytes, 32 * _MIB)))
    return pltpu.CompilerParams(
        dimension_semantics=semantics,
        vmem_limit_bytes=limit,
    )


def _round_up(v, m):
    return ((v + m - 1) // m) * m


def _chunk_rows(hw_f, target_chunks=8):
    """Static in-kernel chunk size along the (folded) HW axis: at most
    `target_chunks` chunks, chunk a multiple of 8 so slices stay aligned."""
    if hw_f <= 8:
        return hw_f
    return min(hw_f, _round_up(-(-hw_f // target_chunks), 8))


def _fold_factor(hw, c, max_k=32):
    """k such that (HW, C) can be viewed contiguously as (HW/k, k*C) with a
    lane-dense (multiple-of-128) last dim.  k == 1 means no fold."""
    if c % 128 == 0:
        return 1
    k = 128 // math.gcd(c, 128)
    if k <= max_k and hw % k == 0:
        return k
    return 1


def _fold_groups(sq, c, k):
    """sq: per-lane sums over the folded view (..., 1, k*C).  Returns the
    per-channel totals tiled back across the k*C lanes:
        total[j] = sum_g sq[(j - g*C) mod kC]   (lanes congruent mod C).
    Cheap: k-1 XLU lane rotations of a tiny vector."""
    if k == 1:
        return sq
    total = sq
    for g in range(1, k):
        total = total + pltpu.roll(sq, shift=g * c, axis=2)
    return total


# ---------------------------------------------------------------------------
# Single-pass kernel: whole (packed-batch, HW_f, kC) tile per grid step
# ---------------------------------------------------------------------------
def _grn_fused_kernel(x_ref, gamma_ref, beta_ref, o_ref, *, eps, c, k):
    """out = gamma*(x*x_norm) + beta + x == x*(gamma*x_norm + 1) + beta."""
    bn, hw_f, kc = x_ref.shape
    chunk = _chunk_rows(hw_f)
    starts = list(range(0, hw_f, chunk))

    # -- chunked f32 sum-of-squares over the HW axis (no full-tile f32 temp) --
    sq = jnp.zeros((bn, 1, kc), jnp.float32)
    for s in starts:
        sz = min(chunk, hw_f - s)
        xc = x_ref[:, s:s + sz, :].astype(jnp.float32)
        sq = sq + jnp.sum(xc * xc, axis=1, keepdims=True)

    sq = _fold_groups(sq, c, k)                       # per-channel totals, tiled
    x_global = jnp.sqrt(sq)                           # (bn, 1, kc)
    # mean over the k*C tiled lanes == mean over the C channels.
    mean_c = jnp.sum(x_global, axis=-1, keepdims=True) * (1.0 / kc)
    x_norm = x_global / (mean_c + eps)                # exact divide: tiny tensor
    scale = gamma_ref[...] * x_norm + 1.0             # f32 (bn, 1, kc)
    bias = beta_ref[...]                              # f32 (1, 1, kc)

    # -- chunked fused epilogue in f32, cast only on the final store --
    for s in starts:
        sz = min(chunk, hw_f - s)
        xc = x_ref[:, s:s + sz, :].astype(jnp.float32)
        o_ref[:, s:s + sz, :] = (xc * scale + bias).astype(o_ref.dtype)


# ---------------------------------------------------------------------------
# Two-pass fallback kernels (HW-tiled; for tiles that overflow the VMEM budget)
# ---------------------------------------------------------------------------
def _grn_sumsq_scale_kernel(x_ref, gamma_ref, scale_ref, *, eps, hw_f, c, k):
    """Pass 1: accumulate per-channel sum of squares over HW tiles, then
    finalize the fused scale (gamma*x_norm + 1) in-kernel at the last step."""
    h = pl.program_id(1)
    _, t, kc = x_ref.shape

    @pl.when(h == 0)
    def _init():
        scale_ref[...] = jnp.zeros_like(scale_ref)

    xf = x_ref[...].astype(jnp.float32)               # (1, t, kc)
    if hw_f % t != 0:                                 # mask the ragged final tile
        rows = lax.broadcasted_iota(jnp.int32, (1, t, 1), 1) + h * t
        xf = jnp.where(rows < hw_f, xf, 0.0)
    scale_ref[...] += jnp.sum(xf * xf, axis=1, keepdims=True)

    @pl.when(h == pl.num_programs(1) - 1)
    def _finalize():
        sq = _fold_groups(scale_ref[...], c, k)
        x_global = jnp.sqrt(sq)
        mean_c = jnp.sum(x_global, axis=-1, keepdims=True) * (1.0 / kc)
        x_norm = x_global / (mean_c + eps)
        scale_ref[...] = gamma_ref[...] * x_norm + 1.0


def _grn_apply_kernel(x_ref, scale_ref, beta_ref, o_ref):
    """Pass 2: pure elementwise x * scale + beta (f32 math, native-dtype store).
    A ragged final row-tile is harmless: out-of-range writes are dropped."""
    xf = x_ref[...].astype(jnp.float32)
    o_ref[...] = (xf * scale_ref[...] + beta_ref[...]).astype(o_ref.dtype)


def _choose_row_tile(hw_f, bytes_per_row, cap_bytes, override=None):
    """Row tile: multiple of 8 (cdiv grid + mask handles the tail) or the
    full extent -- always satisfies the (8,128) BlockSpec rule."""
    if override is not None:
        t = override
        if t != hw_f and (t % 8 != 0 or t > hw_f):
            raise ValueError("row-tile override must be a multiple of 8 (<= rows) "
                             "or the full row extent")
        return t
    if hw_f <= 8:
        return hw_f
    t = int(cap_bytes // max(1, bytes_per_row))
    if t >= hw_f:
        return hw_f
    return max(8, (t // 8) * 8)


def _grn_two_pass(x2, g_t, b_t, eps, n, hw_f, c, k, kc, budget, capacity, row_tile):
    in_item = x2.dtype.itemsize
    cap = min(budget // 2, 24 * _MIB)

    # --- Pass 1: sum of squares + in-kernel finalize to the fused scale ------
    # No large output tile, so the reduction pass can afford a bigger row tile.
    row_b1 = kc * (2 * in_item + 2 * 4)          # dbl-buffered input + f32 temps
    t1 = _choose_row_tile(hw_f, row_b1, cap, row_tile)
    n_h1 = pl.cdiv(hw_f, t1)
    need1 = t1 * row_b1 + 8 * kc * 4 + _MIB
    k1 = functools.partial(_grn_sumsq_scale_kernel, eps=eps, hw_f=hw_f, c=c, k=k)
    scale = pl.pallas_call(
        k1,
        out_shape=jax.ShapeDtypeStruct((n, 1, kc), jnp.float32),
        grid_spec=pltpu.PrefetchScalarGridSpec(
            num_scalar_prefetch=0,
            grid=(n, n_h1),
            in_specs=[pl.BlockSpec((1, t1, kc), lambda i, h: (i, h, 0)),
                      pl.BlockSpec((1, 1, kc), lambda i, h: (0, 0, 0))],
            out_specs=pl.BlockSpec((1, 1, kc), lambda i, h: (i, 0, 0)),
        ),
        compiler_params=_compiler_params(need1, capacity,
                                         ("parallel", "arbitrary")),
    )(x2, g_t)

    # --- Pass 2: elementwise apply, streamed at the HBM roofline --------------
    row_b2 = kc * (2 * in_item + 2 * in_item + 4)  # in + out dbl-buffered + f32
    t2 = _choose_row_tile(hw_f, row_b2, cap, row_tile)
    n_h2 = pl.cdiv(hw_f, t2)
    need2 = t2 * row_b2 + 8 * kc * 4 + _MIB
    out = pl.pallas_call(
        _grn_apply_kernel,
        out_shape=jax.ShapeDtypeStruct((n, hw_f, kc), x2.dtype),
        grid_spec=pltpu.PrefetchScalarGridSpec(
            num_scalar_prefetch=0,
            grid=(n, n_h2),
            in_specs=[pl.BlockSpec((1, t2, kc), lambda i, h: (i, h, 0)),
                      pl.BlockSpec((1, 1, kc), lambda i, h: (i, 0, 0)),
                      pl.BlockSpec((1, 1, kc), lambda i, h: (0, 0, 0))],
            out_specs=pl.BlockSpec((1, t2, kc), lambda i, h: (i, h, 0)),
        ),
        compiler_params=_compiler_params(need2, capacity,
                                         ("parallel", "parallel")),
    )(x2, scale, b_t)
    return out


# ---------------------------------------------------------------------------
# Public wrapper
# ---------------------------------------------------------------------------
def grn(x, gamma, beta, eps=1e-6, *, force_two_pass=False, two_pass_row_tile=None):
    """GRN forward.

    x     : (N, H, W, C)   channels-last
    gamma : (1, 1, 1, C)
    beta  : (1, 1, 1, C)
    """
    n, h, w, c = x.shape
    hw = h * w

    # Lane-dense folding: (HW, C) -> (HW/k, k*C), contiguous view, no data move.
    k = _fold_factor(hw, c)
    hw_f, kc = hw // k, k * c

    x2 = x.reshape(n, hw_f, kc)
    g_t = jnp.tile(gamma.reshape(1, 1, c).astype(jnp.float32), (1, 1, k))
    b_t = jnp.tile(beta.reshape(1, 1, c).astype(jnp.float32), (1, 1, k))

    itemsize = x2.dtype.itemsize
    sample_bytes = hw_f * kc * itemsize
    capacity = _vmem_capacity_bytes()
    budget = (capacity * 3) // 4          # headroom below physical VMEM

    chunk = _chunk_rows(hw_f)

    def single_pass_bytes(b):
        tile = b * sample_bytes
        f32_chunk = b * chunk * kc * 4    # chunked reduction/epilogue temp
        vecs = 8 * b * kc * 4             # sq / x_global / scale / bias vectors
        return 4 * tile + 2 * f32_chunk + vecs + _MIB

    if force_two_pass or single_pass_bytes(1) > budget:
        out = _grn_two_pass(x2, g_t, b_t, eps, n, hw_f, c, k, kc,
                            budget, capacity, two_pass_row_tile)
        return out.reshape(n, h, w, c)

    # Batch packing: biggest bn that (a) keeps the packed tile a few MiB,
    # (b) fits the VMEM budget, and (c) leaves >= min(N, 4) grid steps so
    # each v7x TensorCore keeps >= 2 pipelined steps.
    soft_target = min(24 * _MIB, budget // 4)
    min_steps = min(n, 4)
    bn = 1
    for cand in range(1, n + 1):
        if n % cand:
            continue
        if n // cand < min_steps:
            break
        if cand * sample_bytes > soft_target or single_pass_bytes(cand) > budget:
            break
        bn = cand

    kernel = functools.partial(_grn_fused_kernel, eps=eps, c=c, k=k)
    out = pl.pallas_call(
        kernel,
        out_shape=jax.ShapeDtypeStruct((n, hw_f, kc), x.dtype),
        grid_spec=pltpu.PrefetchScalarGridSpec(
            num_scalar_prefetch=0,
            grid=(n // bn,),
            in_specs=[pl.BlockSpec((bn, hw_f, kc), lambda i: (i, 0, 0)),
                      pl.BlockSpec((1, 1, kc), lambda i: (0, 0, 0)),
                      pl.BlockSpec((1, 1, kc), lambda i: (0, 0, 0))],
            out_specs=pl.BlockSpec((bn, hw_f, kc), lambda i: (i, 0, 0)),
        ),
        compiler_params=_compiler_params(single_pass_bytes(bn), capacity,
                                         ("parallel",)),
    )(x2, g_t, b_t)
    return out.reshape(n, h, w, c)


def grn_reference(x, gamma, beta, eps=1e-6):
    """Pure-JAX reference mirroring the PyTorch forward."""
    x32 = x.astype(jnp.float32)
    x_global = jnp.sqrt(jnp.sum(x32 * x32, axis=(1, 2), keepdims=True))  # (N,1,1,C)
    x_norm = x_global / (jnp.mean(x_global, axis=-1, keepdims=True) + eps)
    out = gamma * (x32 * x_norm) + beta + x32
    return out.astype(x.dtype)


if __name__ == "__main__":
    key = jax.random.PRNGKey(0)
    k_x, k_g, k_b = jax.random.split(key, 3)

    N, H, W, C = 2, 16, 16, 32
    x = jax.random.normal(k_x, (N, H, W, C), dtype=jnp.float32)

    # Module __init__ sets gamma/beta to zeros (shape (1,1,1,C)); use small
    # deterministic non-zero values so the kernel math is exercised.
    gamma = 0.1 * jax.random.normal(k_g, (1, 1, 1, C), dtype=jnp.float32)
    beta = 0.1 * jax.random.normal(k_b, (1, 1, 1, C), dtype=jnp.float32)

    ref = grn_reference(x, gamma, beta)

    # Single-pass (whole-sample tile) path; exercises the lane-dense fold
    # (C=32 -> k=4 -> 128 lanes) and the chunked in-VMEM reduction/epilogue.
    out = jax.block_until_ready(grn(x, gamma, beta))
    assert out.shape == (N, H, W, C)
    assert jnp.allclose(out, ref, atol=1e-4, rtol=1e-4), "single-pass mismatch"

    # Two-pass (HW-tiled) fallback, forced with a small row tile so the
    # cross-tile accumulation, the ragged-final-tile mask, and the in-kernel
    # scale finalization are all exercised on this small shape too.
    out2 = jax.block_until_ready(
        grn(x, gamma, beta, force_two_pass=True, two_pass_row_tile=24))
    assert jnp.allclose(out2, ref, atol=1e-4, rtol=1e-4), "two-pass mismatch"

    print("KERNEL_OK")
</pallas_src>

<mosaic_0001>
module attributes {stable_mosaic.version = 11 : i64} {
  func.func @_grn_fused_kernel(%arg0: i32, %arg1: memref<1x64x128xf32, #tpu.memory_space<vmem>>, %arg2: memref<1x1x128xf32, #tpu.memory_space<vmem>>, %arg3: memref<1x1x128xf32, #tpu.memory_space<vmem>>, %arg4: memref<1x64x128xf32, #tpu.memory_space<vmem>>) attributes {dimension_semantics = [#tpu.dimension_semantics<parallel>], iteration_bounds = array<i64: 2>, scalar_prefetch = 0 : i64, scratch_operands = 0 : i64, tpu.core_type = #tpu.core_type<tc>, window_params = [{transform_indices = @transform_0, window_bounds = array<i64: 1, 64, 128>}, {pipeline_mode = #tpu.pipeline_mode<synchronous>, transform_indices = @transform_1, window_bounds = array<i64: 1, 1, 128>}, {pipeline_mode = #tpu.pipeline_mode<synchronous>, transform_indices = @transform_2, window_bounds = array<i64: 1, 1, 128>}, {transform_indices = @transform_3, window_bounds = array<i64: 1, 64, 128>}]} {
    %cst = arith.constant 0.000000e+00 : f32
    %0 = vector.broadcast %cst : f32 to vector<1x1x128xf32>
    %c0 = arith.constant 0 : index
    %c0_0 = arith.constant 0 : index
    %c0_1 = arith.constant 0 : index
    %1 = vector.load %arg1[%c0, %c0_0, %c0_1] : memref<1x64x128xf32, #tpu.memory_space<vmem>>, vector<1x8x128xf32>
    %2 = arith.mulf %1, %1 : vector<1x8x128xf32>
    %cst_2 = arith.constant dense<0.000000e+00> : vector<1x128xf32>
    %3 = vector.multi_reduction <add>, %2, %cst_2 [1] : vector<1x8x128xf32> to vector<1x128xf32>
    %4 = vector.shape_cast %3 : vector<1x128xf32> to vector<1x1x128xf32>
    %5 = arith.addf %0, %4 : vector<1x1x128xf32>
    %c0_3 = arith.constant 0 : index
    %c8 = arith.constant 8 : index
    %c0_4 = arith.constant 0 : index
    %6 = vector.load %arg1[%c0_3, %c8, %c0_4] : memref<1x64x128xf32, #tpu.memory_space<vmem>>, vector<1x8x128xf32>
    %7 = arith.mulf %6, %6 : vector<1x8x128xf32>
    %cst_5 = arith.constant dense<0.000000e+00> : vector<1x128xf32>
    %8 = vector.multi_reduction <add>, %7, %cst_5 [1] : vector<1x8x128xf32> to vector<1x128xf32>
    %9 = vector.shape_cast %8 : vector<1x128xf32> to vector<1x1x128xf32>
    %10 = arith.addf %5, %9 : vector<1x1x128xf32>
    %c0_6 = arith.constant 0 : index
    %c16 = arith.constant 16 : index
    %c0_7 = arith.constant 0 : index
    %11 = vector.load %arg1[%c0_6, %c16, %c0_7] : memref<1x64x128xf32, #tpu.memory_space<vmem>>, vector<1x8x128xf32>
    %12 = arith.mulf %11, %11 : vector<1x8x128xf32>
    %cst_8 = arith.constant dense<0.000000e+00> : vector<1x128xf32>
    %13 = vector.multi_reduction <add>, %12, %cst_8 [1] : vector<1x8x128xf32> to vector<1x128xf32>
    %14 = vector.shape_cast %13 : vector<1x128xf32> to vector<1x1x128xf32>
    %15 = arith.addf %10, %14 : vector<1x1x128xf32>
    %c0_9 = arith.constant 0 : index
    %c24 = arith.constant 24 : index
    %c0_10 = arith.constant 0 : index
    %16 = vector.load %arg1[%c0_9, %c24, %c0_10] : memref<1x64x128xf32, #tpu.memory_space<vmem>>, vector<1x8x128xf32>
    %17 = arith.mulf %16, %16 : vector<1x8x128xf32>
    %cst_11 = arith.constant dense<0.000000e+00> : vector<1x128xf32>
    %18 = vector.multi_reduction <add>, %17, %cst_11 [1] : vector<1x8x128xf32> to vector<1x128xf32>
    %19 = vector.shape_cast %18 : vector<1x128xf32> to vector<1x1x128xf32>
    %20 = arith.addf %15, %19 : vector<1x1x128xf32>
    %c0_12 = arith.constant 0 : index
    %c32 = arith.constant 32 : index
    %c0_13 = arith.constant 0 : index
    %21 = vector.load %arg1[%c0_12, %c32, %c0_13] : memref<1x64x128xf32, #tpu.memory_space<vmem>>, vector<1x8x128xf32>
    %22 = arith.mulf %21, %21 : vector<1x8x128xf32>
    %cst_14 = arith.constant dense<0.000000e+00> : vector<1x128xf32>
    %23 = vector.multi_reduction <add>, %22, %cst_14 [1] : vector<1x8x128xf32> to vector<1x128xf32>
    %24 = vector.shape_cast %23 : vector<1x128xf32> to vector<1x1x128xf32>
    %25 = arith.addf %20, %24 : vector<1x1x128xf32>
    %c0_15 = arith.constant 0 : index
    %c40 = arith.constant 40 : index
    %c0_16 = arith.constant 0 : index
    %26 = vector.load %arg1[%c0_15, %c40, %c0_16] : memref<1x64x128xf32, #tpu.memory_space<vmem>>, vector<1x8x128xf32>
    %27 = arith.mulf %26, %26 : vector<1x8x128xf32>
    %cst_17 = arith.constant dense<0.000000e+00> : vector<1x128xf32>
    %28 = vector.multi_reduction <add>, %27, %cst_17 [1] : vector<1x8x128xf32> to vector<1x128xf32>
    %29 = vector.shape_cast %28 : vector<1x128xf32> to vector<1x1x128xf32>
    %30 = arith.addf %25, %29 : vector<1x1x128xf32>
    %c0_18 = arith.constant 0 : index
    %c48 = arith.constant 48 : index
    %c0_19 = arith.constant 0 : index
    %31 = vector.load %arg1[%c0_18, %c48, %c0_19] : memref<1x64x128xf32, #tpu.memory_space<vmem>>, vector<1x8x128xf32>
    %32 = arith.mulf %31, %31 : vector<1x8x128xf32>
    %cst_20 = arith.constant dense<0.000000e+00> : vector<1x128xf32>
    %33 = vector.multi_reduction <add>, %32, %cst_20 [1] : vector<1x8x128xf32> to vector<1x128xf32>
    %34 = vector.shape_cast %33 : vector<1x128xf32> to vector<1x1x128xf32>
    %35 = arith.addf %30, %34 : vector<1x1x128xf32>
    %c0_21 = arith.constant 0 : index
    %c56 = arith.constant 56 : index
    %c0_22 = arith.constant 0 : index
    %36 = vector.load %arg1[%c0_21, %c56, %c0_22] : memref<1x64x128xf32, #tpu.memory_space<vmem>>, vector<1x8x128xf32>
    %37 = arith.mulf %36, %36 : vector<1x8x128xf32>
    %cst_23 = arith.constant dense<0.000000e+00> : vector<1x128xf32>
    %38 = vector.multi_reduction <add>, %37, %cst_23 [1] : vector<1x8x128xf32> to vector<1x128xf32>
    %39 = vector.shape_cast %38 : vector<1x128xf32> to vector<1x1x128xf32>
    %40 = arith.addf %35, %39 : vector<1x1x128xf32>
    %c32_i32 = arith.constant 32 : i32
    %41 = tpu.dynamic_rotate %40 by %c32_i32 dim 2 : vector<1x1x128xf32>, i32 -> vector<1x1x128xf32>
    %42 = arith.addf %40, %41 : vector<1x1x128xf32>
    %c64_i32 = arith.constant 64 : i32
    %43 = tpu.dynamic_rotate %40 by %c64_i32 dim 2 : vector<1x1x128xf32>, i32 -> vector<1x1x128xf32>
    %44 = arith.addf %42, %43 : vector<1x1x128xf32>
    %c96_i32 = arith.constant 96 : i32
    %45 = tpu.dynamic_rotate %40 by %c96_i32 dim 2 : vector<1x1x128xf32>, i32 -> vector<1x1x128xf32>
    %46 = arith.addf %44, %45 : vector<1x1x128xf32>
    %47 = math.sqrt %46 : vector<1x1x128xf32>
    %cst_24 = arith.constant dense<0.000000e+00> : vector<1x1xf32>
    %48 = vector.multi_reduction <add>, %47, %cst_24 [2] : vector<1x1x128xf32> to vector<1x1xf32>
    %49 = vector.shape_cast %48 : vector<1x1xf32> to vector<1x1x1xf32>
    %cst_25 = arith.constant 7.812500e-03 : f32
    %50 = vector.broadcast %cst_25 : f32 to vector<1x1x1xf32>
    %51 = arith.mulf %49, %50 : vector<1x1x1xf32>
    %cst_26 = arith.constant 9.99999997E-7 : f32
    %52 = vector.broadcast %cst_26 : f32 to vector<1x1x1xf32>
    %53 = arith.addf %51, %52 : vector<1x1x1xf32>
    %54 = vector.broadcast %53 : vector<1x1x1xf32> to vector<1x1x128xf32>
    %55 = arith.divf %47, %54 : vector<1x1x128xf32>
    %c0_27 = arith.constant 0 : index
    %c0_28 = arith.constant 0 : index
    %c0_29 = arith.constant 0 : index
    %56 = vector.load %arg2[%c0_27, %c0_28, %c0_29] : memref<1x1x128xf32, #tpu.memory_space<vmem>>, vector<1x1x128xf32>
    %57 = arith.mulf %56, %55 : vector<1x1x128xf32>
    %cst_30 = arith.constant 1.000000e+00 : f32
    %58 = vector.broadcast %cst_30 : f32 to vector<1x1x128xf32>
    %59 = arith.addf %57, %58 : vector<1x1x128xf32>
    %c0_31 = arith.constant 0 : index
    %c0_32 = arith.constant 0 : index
    %c0_33 = arith.constant 0 : index
    %60 = vector.load %arg3[%c0_31, %c0_32, %c0_33] : memref<1x1x128xf32, #tpu.memory_space<vmem>>, vector<1x1x128xf32>
    %c0_34 = arith.constant 0 : index
    %c0_35 = arith.constant 0 : index
    %c0_36 = arith.constant 0 : index
    %61 = vector.load %arg1[%c0_34, %c0_35, %c0_36] : memref<1x64x128xf32, #tpu.memory_space<vmem>>, vector<1x8x128xf32>
    %62 = vector.broadcast %59 : vector<1x1x128xf32> to vector<1x8x128xf32>
    %63 = arith.mulf %61, %62 : vector<1x8x128xf32>
    %64 = vector.broadcast %60 : vector<1x1x128xf32> to vector<1x8x128xf32>
    %65 = arith.addf %63, %64 : vector<1x8x128xf32>
    %c0_37 = arith.constant 0 : index
    %c0_38 = arith.constant 0 : index
    %c0_39 = arith.constant 0 : index
    %66 = vector.load %arg4[%c0_37, %c0_38, %c0_39] : memref<1x64x128xf32, #tpu.memory_space<vmem>>, vector<1x8x128xf32>
    tpu.vector_store %arg4[%c0_37, %c0_38, %c0_39], %65 {strides = array<i32>} : memref<1x64x128xf32, #tpu.memory_space<vmem>>, vector<1x8x128xf32>,
    %c0_40 = arith.constant 0 : index
    %c8_41 = arith.constant 8 : index
    %c0_42 = arith.constant 0 : index
    %67 = vector.load %arg1[%c0_40, %c8_41, %c0_42] : memref<1x64x128xf32, #tpu.memory_space<vmem>>, vector<1x8x128xf32>
    %68 = vector.broadcast %59 : vector<1x1x128xf32> to vector<1x8x128xf32>
    %69 = arith.mulf %67, %68 : vector<1x8x128xf32>
    %70 = vector.broadcast %60 : vector<1x1x128xf32> to vector<1x8x128xf32>
    %71 = arith.addf %69, %70 : vector<1x8x128xf32>
    %c0_43 = arith.constant 0 : index
    %c8_44 = arith.constant 8 : index
    %c0_45 = arith.constant 0 : index
    %72 = vector.load %arg4[%c0_43, %c8_44, %c0_45] : memref<1x64x128xf32, #tpu.memory_space<vmem>>, vector<1x8x128xf32>
    tpu.vector_store %arg4[%c0_43, %c8_44, %c0_45], %71 {strides = array<i32>} : memref<1x64x128xf32, #tpu.memory_space<vmem>>, vector<1x8x128xf32>,
    %c0_46 = arith.constant 0 : index
    %c16_47 = arith.constant 16 : index
    %c0_48 = arith.constant 0 : index
    %73 = vector.load %arg1[%c0_46, %c16_47, %c0_48] : memref<1x64x128xf32, #tpu.memory_space<vmem>>, vector<1x8x128xf32>
    %74 = vector.broadcast %59 : vector<1x1x128xf32> to vector<1x8x128xf32>
    %75 = arith.mulf %73, %74 : vector<1x8x128xf32>
    %76 = vector.broadcast %60 : vector<1x1x128xf32> to vector<1x8x128xf32>
    %77 = arith.addf %75, %76 : vector<1x8x128xf32>
    %c0_49 = arith.constant 0 : index
    %c16_50 = arith.constant 16 : index
    %c0_51 = arith.constant 0 : index
    %78 = vector.load %arg4[%c0_49, %c16_50, %c0_51] : memref<1x64x128xf32, #tpu.memory_space<vmem>>, vector<1x8x128xf32>
    tpu.vector_store %arg4[%c0_49, %c16_50, %c0_51], %77 {strides = array<i32>} : memref<1x64x128xf32, #tpu.memory_space<vmem>>, vector<1x8x128xf32>,
    %c0_52 = arith.constant 0 : index
    %c24_53 = arith.constant 24 : index
    %c0_54 = arith.constant 0 : index
    %79 = vector.load %arg1[%c0_52, %c24_53, %c0_54] : memref<1x64x128xf32, #tpu.memory_space<vmem>>, vector<1x8x128xf32>
    %80 = vector.broadcast %59 : vector<1x1x128xf32> to vector<1x8x128xf32>
    %81 = arith.mulf %79, %80 : vector<1x8x128xf32>
    %82 = vector.broadcast %60 : vector<1x1x128xf32> to vector<1x8x128xf32>
    %83 = arith.addf %81, %82 : vector<1x8x128xf32>
    %c0_55 = arith.constant 0 : index
    %c24_56 = arith.constant 24 : index
    %c0_57 = arith.constant 0 : index
    %84 = vector.load %arg4[%c0_55, %c24_56, %c0_57] : memref<1x64x128xf32, #tpu.memory_space<vmem>>, vector<1x8x128xf32>
    tpu.vector_store %arg4[%c0_55, %c24_56, %c0_57], %83 {strides = array<i32>} : memref<1x64x128xf32, #tpu.memory_space<vmem>>, vector<1x8x128xf32>,
    %c0_58 = arith.constant 0 : index
    %c32_59 = arith.constant 32 : index
    %c0_60 = arith.constant 0 : index
    %85 = vector.load %arg1[%c0_58, %c32_59, %c0_60] : memref<1x64x128xf32, #tpu.memory_space<vmem>>, vector<1x8x128xf32>
    %86 = vector.broadcast %59 : vector<1x1x128xf32> to vector<1x8x128xf32>
    %87 = arith.mulf %85, %86 : vector<1x8x128xf32>
    %88 = vector.broadcast %60 : vector<1x1x128xf32> to vector<1x8x128xf32>
    %89 = arith.addf %87, %88 : vector<1x8x128xf32>
    %c0_61 = arith.constant 0 : index
    %c32_62 = arith.constant 32 : index
    %c0_63 = arith.constant 0 : index
    %90 = vector.load %arg4[%c0_61, %c32_62, %c0_63] : memref<1x64x128xf32, #tpu.memory_space<vmem>>, vector<1x8x128xf32>
    tpu.vector_store %arg4[%c0_61, %c32_62, %c0_63], %89 {strides = array<i32>} : memref<1x64x128xf32, #tpu.memory_space<vmem>>, vector<1x8x128xf32>,
    %c0_64 = arith.constant 0 : index
    %c40_65 = arith.constant 40 : index
    %c0_66 = arith.constant 0 : index
    %91 = vector.load %arg1[%c0_64, %c40_65, %c0_66] : memref<1x64x128xf32, #tpu.memory_space<vmem>>, vector<1x8x128xf32>
    %92 = vector.broadcast %59 : vector<1x1x128xf32> to vector<1x8x128xf32>
    %93 = arith.mulf %91, %92 : vector<1x8x128xf32>
    %94 = vector.broadcast %60 : vector<1x1x128xf32> to vector<1x8x128xf32>
    %95 = arith.addf %93, %94 : vector<1x8x128xf32>
    %c0_67 = arith.constant 0 : index
    %c40_68 = arith.constant 40 : index
    %c0_69 = arith.constant 0 : index
    %96 = vector.load %arg4[%c0_67, %c40_68, %c0_69] : memref<1x64x128xf32, #tpu.memory_space<vmem>>, vector<1x8x128xf32>
    tpu.vector_store %arg4[%c0_67, %c40_68, %c0_69], %95 {strides = array<i32>} : memref<1x64x128xf32, #tpu.memory_space<vmem>>, vector<1x8x128xf32>,
    %c0_70 = arith.constant 0 : index
    %c48_71 = arith.constant 48 : index
    %c0_72 = arith.constant 0 : index
    %97 = vector.load %arg1[%c0_70, %c48_71, %c0_72] : memref<1x64x128xf32, #tpu.memory_space<vmem>>, vector<1x8x128xf32>
    %98 = vector.broadcast %59 : vector<1x1x128xf32> to vector<1x8x128xf32>
    %99 = arith.mulf %97, %98 : vector<1x8x128xf32>
    %100 = vector.broadcast %60 : vector<1x1x128xf32> to vector<1x8x128xf32>
    %101 = arith.addf %99, %100 : vector<1x8x128xf32>
    %c0_73 = arith.constant 0 : index
    %c48_74 = arith.constant 48 : index
    %c0_75 = arith.constant 0 : index
    %102 = vector.load %arg4[%c0_73, %c48_74, %c0_75] : memref<1x64x128xf32, #tpu.memory_space<vmem>>, vector<1x8x128xf32>
    tpu.vector_store %arg4[%c0_73, %c48_74, %c0_75], %101 {strides = array<i32>} : memref<1x64x128xf32, #tpu.memory_space<vmem>>, vector<1x8x128xf32>,
    %c0_76 = arith.constant 0 : index
    %c56_77 = arith.constant 56 : index
    %c0_78 = arith.constant 0 : index
    %103 = vector.load %arg1[%c0_76, %c56_77, %c0_78] : memref<1x64x128xf32, #tpu.memory_space<vmem>>, vector<1x8x128xf32>
    %104 = vector.broadcast %59 : vector<1x1x128xf32> to vector<1x8x128xf32>
    %105 = arith.mulf %103, %104 : vector<1x8x128xf32>
    %106 = vector.broadcast %60 : vector<1x1x128xf32> to vector<1x8x128xf32>
    %107 = arith.addf %105, %106 : vector<1x8x128xf32>
    %c0_79 = arith.constant 0 : index
    %c56_80 = arith.constant 56 : index
    %c0_81 = arith.constant 0 : index
    %108 = vector.load %arg4[%c0_79, %c56_80, %c0_81] : memref<1x64x128xf32, #tpu.memory_space<vmem>>, vector<1x8x128xf32>
    tpu.vector_store %arg4[%c0_79, %c56_80, %c0_81], %107 {strides = array<i32>} : memref<1x64x128xf32, #tpu.memory_space<vmem>>, vector<1x8x128xf32>,
    return
  }
  func.func @transform_0(%arg0: i32) -> (i32, i32, i32) {
    %c0_i32 = arith.constant 0 : i32
    %c0_i32_0 = arith.constant 0 : i32
    %c0_i32_1 = arith.constant 0 : i32
    return %arg0, %c0_i32, %c0_i32_0 : i32, i32, i32
  }
  func.func @transform_1(%arg0: i32) -> (i32, i32, i32) {
    %c0_i32 = arith.constant 0 : i32
    %c0_i32_0 = arith.constant 0 : i32
    %c0_i32_1 = arith.constant 0 : i32
    %c0_i32_2 = arith.constant 0 : i32
    return %c0_i32, %c0_i32_0, %c0_i32_1 : i32, i32, i32
  }
  func.func @transform_2(%arg0: i32) -> (i32, i32, i32) {
    %c0_i32 = arith.constant 0 : i32
    %c0_i32_0 = arith.constant 0 : i32
    %c0_i32_1 = arith.constant 0 : i32
    %c0_i32_2 = arith.constant 0 : i32
    return %c0_i32, %c0_i32_0, %c0_i32_1 : i32, i32, i32
  }
  func.func @transform_3(%arg0: i32) -> (i32, i32, i32) {
    %c0_i32 = arith.constant 0 : i32
    %c0_i32_0 = arith.constant 0 : i32
    %c0_i32_1 = arith.constant 0 : i32
    return %arg0, %c0_i32, %c0_i32_0 : i32, i32, i32
  }
}

</mosaic_0001>

<bundles_post_ra>
// kernel: tpu_custom_call.1
= control target key start
LH: loop header
LB: loop body
LE: loop exit
PB: predicated region body
PF: predicated region fallthrough
CT: control target
= control target key end

     0   :  { %8 = vsyncpa [#allocation3], 0  ;;  %s896_s0 = inlined_call_operand.hbm [shape: f32[2,64,128], index: 0, kind: input, shape index: {}]   ;;  %s897_s1 = inlined_call_operand.hbm [shape: f32[1,1,128], index: 1, kind: input, shape index: {}]   ;;  %s898_s2 = inlined_call_operand.vmem [shape: f32[1,1,128], index: 2, kind: input, shape index: {}]   ;;  %s899_s3 = inlined_call_operand.hbm [shape: f32[2,64,128], index: 3, kind: output, shape index: {}]  }
   0x1   :  { %10 = vsyncpa [#allocation3 + $0x1], 0 }
   0x2   :  { %11 = vsyncpa [#allocation6], 0 }
   0x3   :  { %12 = vsyncpa [#allocation4], 0 }
   0x4   :  { %14 = vsyncpa [#allocation4 + $0x1], 0  ;;  %s707_s12 = smov 0   ;;  %s709_s13 = smov 0  }
   0x5   :  { %s711_s14 = smov 0   ;;  %s713_s15 = smov 0  }
   0x6 LB: > { %s728_s16 = sadd.s32 4294967295, %s677_s15   ;;  %s460_s17 = sadd.s32 4294967294, %s677_s15   ;;  %s677_s15 = sphi %s713_s15, %s910_s15   ;;  %s673_s14 = sphi %s711_s14, %s909_s14   ;;  %s669_s13 = sphi %s709_s13, %s908_s13   ;;  %s665_s12 = sphi %s707_s12, %s907_s12  }
   0x7   : > { %s732_s18 = sadd.s32 1, %s677_s15   ;;  %s27_s19 = sadd.s32 1, %s673_s14 }
   0x8   : > { %s24_s20 = ssub.s32 %s677_s15, %s732_s18  ;;  %p34_p0 = scmp.ne.s32.totalorder %s673_s14, %s669_s13 }
   0x9   : > { %p25_p1 = scmp.eq.s32.totalorder %s24_s20, 0  ;;  %p35_p2 = scmp.eq.s32.totalorder %s677_s15, 0 }
   0xa   : > { %p40_p3 = scmp.ne.s32.totalorder %s669_s13, %s665_s12  ;;  %p41_p4 = scmp.eq.s32.totalorder %s728_s16, 0 }
   0xb   : > { %s744_s21 = scalar_select %p25_p1, %s673_s14, %s27_s19  }
   0xc   : > { %p746_p5 = por %p35_p2, %p34_p0  ;;  %p752_p6 = por %p41_p4, %p40_p3 }
   0xd   : > { %p106_p7 = scmp.eq.s32.totalorder %s728_s16, 1  ;;  %p112_p8 = scmp.eq.s32.totalorder %s460_s17, 1 }
   0xe   : > { %p461_p9 = scmp.ge.s32.totalorder %s677_s15, 1  ;;  %p119_p10 = scmp.lt.s32.totalorder %s677_s15, 3 }
   0xf   : > { %p759_p11 = por %p106_p7, %p34_p0  ;;  %p763_p12 = por %p112_p8, %p40_p3 }
  0x10   : > { %p767_p13 = pnand %p461_p9, %p119_p10  ;;  %s131_s29 = sshll.u32 %s897_s1, 4  ;;  %s132_s29 = int_to_ptr.hbm [resolvable:$true] %s131_s29 }
  0x11   : > { %s679_s30 = smov [#allocation5]   ;;  %p499_p3 = scmp.lt.s32.totalorder %s677_s15, 2 }
  0x12   : > { %p486_p1 = pneg %p767_p13  ;;  %s133_s4 = sshll.u32 %s679_s30, 4  ;;  %s134_s4 = int_to_ptr.vmem [resolvable:$true] %s133_s4 }
  0x13   : > { %s147_s5 = sand.u32 1, %s673_s14   ;;  %p783_p7 = pnand %p499_p3, %p746_p5 }
  0x14   : > { %p487_p2 = pnand %p486_p1, %p41_p4  ;;  %s464_s7 = sshll.u32 %s147_s5, 6 }
  0x15   : > { %s476_s8 = sshll.u32 %s677_s15, 6  ;;  %s151_s19 = scalar_lea.vmem [#allocation2], %s464_s7 }
  0x16   : > { %489 = dma.hbm_to_vmem [thread:$0]  (!%p487_p2), %s132_s29, 16, %s134_s4, [#allocation6]  }
  0x17   : > { %s156_s11 = scalar_lea.hbm %s896_s0, %s476_s8  ;;  %s159_s20 = sshll.u32 %s151_s19, 4  ;;  %s160_s20 = int_to_ptr.vmem [resolvable:$true] %s159_s20 }
  0x18   : > { %s157_s17 = sshll.u32 %s156_s11, 4  ;;  %s148_s27 = scalar_lea.sflag [#allocation3], %s147_s5  ;;  %s158_s17 = int_to_ptr.hbm [resolvable:$true] %s157_s17 }
  0x19   : > { %s577_s28 = sshra.s32 %s158_s17, 4  ;;  %p581_p8 = pneg %p783_p7  ;;  %s578_s28 = int_to_ptr.hbm [resolvable:$true] %s577_s28 }
  0x1a   : > { %s579_s22 = scalar_lea.hbm %s578_s28, 64  ;;  %s584_s4 = scalar_lea.hbm %s896_s0, 128 }
  0x1b   : > { %p580_p5 = scmp.ne.s32.totalorder %s578_s28, %s579_s22  ;;  %p585_p1 = scmp.lt.s32.totalorder %s578_s28, %s896_s0 }
  0x1c   : > { %p586_p2 = scmp.lt.s32.totalorder %s584_s4, %s579_s22 }
  0x1d   : > { %p582_p9 = pnand %p581_p8, %p580_p5 }
  0x1e   : > { %p587_p3 = por %p586_p2, %p585_p1 }
  0x1f   : > { %p583_p10 = pneg %p582_p9 }
  0x21   : > { %p588_p0 = pnand %p587_p3, %p583_p10 }
  0x23   : > { %591 = shalt.err (!%p588_p0)
}
  0x24   : > { %s680_s5 = smov 128   ;;  %s681_s7 = smov 8  }
  0x25   : > { %493 = dma.hbm_to_vmem [thread:$0]  (!%p783_p7), %s158_s17, 1024, %s160_s20, %s148_s27, %s680_s5, %s680_s5, %s681_s7  }
  0x26   : > { %171 = sbr.rel (%p767_p13) target bundleno = 384 (0x180), region = 32  ;;  %s804_s10 = sand.u32 (!%p767_p13), 1, %s669_s13  }
  0x27   : > { %s468_s11 = sshll.u32 (!%p767_p13), %s804_s10, 6  ;;  %s174_s19 = scalar_lea.sflag (!%p767_p13), [#allocation3], %s804_s10 }
  0x28   : > { %s177_s28 = scalar_lea.vmem (!%p767_p13), [#allocation2], %s468_s11 }
  0x2b   : > { %652 = dma.done.wait (%p752_p6), %s174_s19, 1024  }
  0x2c   : > { %654 = vsyncadd (%p752_p6), %s174_s19, 4294966272 }
  0x2d   : > { %656 = dma.done.wait (%p41_p4), [#allocation6], 16  }
  0x2e   : > { %658 = vsyncadd (%p41_p4), [#allocation6], 4294967280  ;;  %v818_v0 = vld [vmem:[%s177_s28] sm:$0xff]  ;;  %v820_v1 = vld [vmem:[%s177_s28 + $0x8] sm:$0xff]  ;;  %s682_s23 = smov 32   ;;  %s683_s26 = smov 96  }
  0x2f   : > { %v822_v2 = vld [vmem:[%s177_s28 + $0x10] sm:$0xff]  ;;  %v207_v3 = vmul.f32 %v818_v0, %v818_v0  ;;  %v216_v4 = vmul.f32 %v820_v1, %v820_v1  ;;  %v830_v6 = vld [vmem:[%s177_s28 + $0x18] sm:$0xff]  ;;  %v832_v7 = vld [vmem:[%s177_s28 + $0x20] sm:$0xff]  ;;  %s684_s6 = smov 64   ;;  %vm299_vm1 = vcmask 1040384   ;;  %s477_s27 = sshll.u32 %s728_s16, 6 }
  0x30   : > { %v225_v5 = vmul.f32 %v822_v2, %v822_v2  ;;  %v834_v8 = vld [vmem:[%s177_s28 + $0x28] sm:$0xff]  ;;  %v234_v9 = vmul.f32 %v830_v6, %v830_v6  ;;  %v243_v10 = vmul.f32 %v832_v7, %v832_v7  ;;  %v842_v12 = vld [vmem:[%s177_s28 + $0x30] sm:$0xff]  ;;  %v844_v13 = vld [vmem:[%s177_s28 + $0x38] sm:$0xff]  ;;  %s373_s16 = scalar_lea.hbm %s899_s3, %s477_s27  ;;  %s205_s30 = scalar_lea.vmem [#allocation7], %s468_s11 }
  0x31   : > { %v252_v11 = vmul.f32 %v834_v8, %v834_v8  ;;  %v208_v14 = vrot.slane %v207_v3, 4  ;;  %v217_v15 = vrot.slane %v216_v4, 4  ;;  %v261_v17 = vmul.f32 %v842_v12, %v842_v12  ;;  %s374_s4 = sshll.u32 %s205_s30, 4  ;;  %s376_s9 = sshll.u32 %s373_s16, 4  ;;  %s375_s4 = int_to_ptr.vmem [resolvable:$true] %s374_s4  ;;  %s377_s9 = int_to_ptr.hbm [resolvable:$true] %s376_s9 }
  0x32   : > { %v226_v16 = vrot.slane %v225_v5, 4  ;;  %v235_v18 = vrot.slane %v234_v9, 4  ;;  %v244_v19 = vrot.slane %v243_v10, 4  ;;  %v270_v21 = vmul.f32 %v844_v13, %v844_v13  ;;  %s362_s8 = scalar_lea.sflag [#allocation4], %s804_s10  ;;  %s621_s5 = sshra.s32 %s377_s9, 4  ;;  %s622_s5 = int_to_ptr.hbm [resolvable:$true] %s621_s5 }
  0x33   : > { %v253_v20 = vrot.slane %v252_v11, 4  ;;  %v209_v22 = vadd.f32 %v208_v14, %v207_v3  ;;  %v218_v23 = vadd.f32 %v217_v15, %v216_v4  ;;  %v262_v25 = vrot.slane %v261_v17, 4  ;;  %s623_s7 = scalar_lea.hbm %s622_s5, 64  ;;  %s627_s28 = scalar_lea.hbm %s899_s3, 128 }
  0x34   : > { %v227_v24 = vadd.f32 %v226_v16, %v225_v5  ;;  %v236_v26 = vadd.f32 %v235_v18, %v234_v9  ;;  %v245_v27 = vadd.f32 %v244_v19, %v243_v10  ;;  %v271_v29 = vrot.slane %v270_v21, 4  ;;  %p624_p4 = scmp.ne.s32.totalorder %s622_s5, %s623_s7  ;;  %p628_p0 = scmp.lt.s32.totalorder %s622_s5, %s899_s3 }
  0x35   : > { %v254_v28 = vadd.f32 %v253_v20, %v252_v11  ;;  %v210_v30 = vrot.slane %v209_v22, 2  ;;  %v219_v31 = vrot.slane %v218_v23, 2  ;;  %v263_v33 = vadd.f32 %v262_v25, %v261_v17  ;;  %p629_p7 = scmp.lt.s32.totalorder %s627_s28, %s623_s7 }
  0x36   : > { %v228_v32 = vrot.slane %v227_v24, 2  ;;  %v237_v34 = vrot.slane %v236_v26, 2  ;;  %v246_v35 = vrot.slane %v245_v27, 2  ;;  %v272_v37 = vadd.f32 %v271_v29, %v270_v21  ;;  %p625_p6 = pnand %p624_p4, %p759_p11 }
  0x37   : > { %v255_v36 = vrot.slane %v254_v28, 2  ;;  %v211_v38 = vadd.f32 %v210_v30, %v209_v22  ;;  %v220_v39 = vadd.f32 %v219_v31, %v218_v23  ;;  %v264_v41 = vrot.slane %v263_v33, 2  ;;  %p630_p5 = por %p629_p7, %p628_p0 }
  0x38   : > { %v229_v40 = vadd.f32 %v228_v32, %v227_v24  ;;  %v238_v42 = vadd.f32 %v237_v34, %v236_v26  ;;  %v247_v43 = vadd.f32 %v246_v35, %v245_v27  ;;  %v273_v48 = vrot.slane %v272_v37, 2  ;;  %p626_p13 = pneg %p625_p6 }
  0x39   : > { %v256_v44 = vadd.f32 %v255_v36, %v254_v28  ;;  %v212_v45 = vrot.slane %v211_v38, 1  ;;  %v221_v46 = vrot.slane %v220_v39, 1  ;;  %v265_v50 = vadd.f32 %v264_v41, %v263_v33 }
  0x3a   : > { %v230_v47 = vrot.slane %v229_v40, 1  ;;  %v239_v49 = vrot.slane %v238_v42, 1  ;;  %v248_v54 = vrot.slane %v247_v43, 1  ;;  %v274_v58 = vadd.f32 %v273_v48, %v272_v37  ;;  %p631_p8 = pnand %p630_p5, %p626_p13 }
  0x3b   : > { %v213_v51 = vadd.f32 %v212_v45, %v211_v38  ;;  %v222_v52 = vadd.f32 %v221_v46, %v220_v39  ;;  %v257_v57 = vrot.slane %v256_v44, 1  ;;  %v266_v61 = vrot.slane %v265_v50, 1 }
  0x3c   : > { %v231_v53 = vadd.f32 %v230_v47, %v229_v40  ;;  %v240_v56 = vadd.f32 %v239_v49, %v238_v42  ;;  %v249_v60 = vadd.f32 %v248_v54, %v247_v43  ;;  %v275_v3 = vrot.slane %v274_v58, 1 }
  0x3d   : > { %v223_v55 = vadd.f32 %v222_v52, %v213_v51  ;;  %v258_v63 = vadd.f32 %v257_v57, %v256_v44  ;;  %v267_v5 = vadd.f32 %v266_v61, %v265_v50  ;;  %v320_v44 = vld [vmem:[#allocation5] sm:$0x1] }
  0x3e   : > { %v276_v10 = vadd.f32 %v275_v3, %v274_v58  ;;  %v542_v50 = vld [vmem:[%s898_s2] ss:$0 sm:$0xff] }
  0x3f   : > { %v232_v59 = vadd.f32 %v231_v53, %v223_v55 }
  0x41   : > { %v241_v62 = vadd.f32 %v240_v56, %v232_v59 }
  0x43   : > { %v250_v4 = vadd.f32 %v249_v60, %v241_v62 }
  0x45   : > { %v259_v9 = vadd.f32 %v258_v63, %v250_v4 }
  0x47   : > { %v268_v11 = vadd.f32 %v267_v5, %v259_v9 }
  0x49   : > { %v277_v14 = vadd.f32 %v276_v10, %v268_v11 }
  0x4b   : > { %278 = vrot.lane.b32.xlu0 %v277_v14, %s682_s23  ;;  %284 = vrot.lane.b32.xlu1 %v277_v14, %s683_s26 }
  0x53   : > { %281 = vrot.lane.b32.xlu0 %v277_v14, %s684_s6 }
  0xbd   : > { %v279_v15 = vpop.permute.xlu0 %278  ;;  %v285_v18 = vpop.permute.xlu1 %284 }
  0xbe   : > { %v280_v16 = vadd.f32 %v279_v15, %v277_v14 }
  0xc5   : > { %v282_v17 = vpop.permute.xlu0 %281 }
  0xc6   : > { %v283_v19 = vadd.f32 %v282_v17, %v280_v16 }
  0xc8   : > { %v286_v20 = vadd.f32 %v285_v18, %v283_v19 }
  0xca   : > { %543 = vrsqrt.f32 %v286_v20  ;;  %vm294_vm0 = vcmp.eq.f32.partialorder %v286_v20, inf  ;;  %v297_v28 = vand.u32 2147483648, %v286_v20  ;;  %vm296_vm2 = vcmp.eq.f32.partialorder %v286_v20, 0.0 }
  0xd0   : > { %v544_v21 = vpop.eup %543 }
  0xd1   : > { %v288_v22 = vmul.f32 %v544_v21, %v286_v20 }
  0xd3   : > { %v289_v23 = vmul.f32 %v544_v21, %v288_v22 }
  0xd5   : > { %v290_v24 = vmul.f32 0.5, %v289_v23 }
  0xd7   : > { %v291_v25 = vsub.f32 1.5, %v290_v24 }
  0xd9   : > { %v292_v26 = vmul.f32 %v544_v21, %v291_v25 }
  0xdb   : > { %v293_v27 = vmul.f32 %v292_v26, %v286_v20 }
  0xdd   : > { %v295_v29 = vsel %vm294_vm0, %v286_v20, %v293_v27 }
  0xde   : > { %v298_v30 = vsel %vm296_vm2, %v297_v28, %v295_v29 }
  0xdf   : > { %v300_v31 = vsel %vm299_vm1, %v298_v30, 0.0 }
  0xe0   : > { %301 = vadd.xlane.f32.xlu1 %v300_v31 }
 0x153   : > { %v302_v32 = vpop.xlane.xlu1 %301 }
 0x154   : > { %v303_v33 = vmul.f32 0.0078125, %v302_v32 }
 0x156   : > { %v304_v34 = vadd.f32 1e-06, %v303_v33 }
 0x158   : > { %545 = vrcp.f32 %v304_v34  ;;  %v316_v38 = vand.u32 2147483648, %v304_v34  ;;  %v314_v40 = vand.u32 2147483647, %v304_v34  ;;  %vm310_vm4 = vweird.f32 %v304_v34 }
 0x15a   : > { %v317_v42 = vor.u32 1.1754944e-38, %v316_v38  ;;  %vm315_vm6 = vcmp.eq.f32.partialorder %v314_v40, 8.507059e+37 }
 0x15e   : > { %v546_v35 = vpop.eup %545 }
 0x15f   : > { %v306_v36 = vmul.f32 %v546_v35, %v304_v34  ;;  %vm311_vm3 = vweird.f32 %v546_v35 }
 0x160   : > { %vm312_vm5 = vmor %vm310_vm4, %vm311_vm3 }
 0x161   : > { %v307_v37 = vsub.f32 1.0, %v306_v36 }
 0x163   : > { %v308_v39 = vmul.f32 %v546_v35, %v307_v37 }
 0x165   : > { %v309_v41 = vadd.f32 %v546_v35, %v308_v39 }
 0x167   : > { %v313_v43 = vsel %vm312_vm5, %v546_v35, %v309_v41 }
 0x168   : > { %v318_v45 = vsel %vm315_vm6, %v317_v42, %v313_v43 }
 0x169   : > { %v319_v46 = vmul.f32 %v318_v45, %v298_v30 }
 0x16b   : > { %v321_v47 = vmul.f32 %v320_v44, %v319_v46 }
 0x16d   : > { %v322_v48 = vadd.f32 1.0, %v321_v47 }
 0x16f   : > { %v325_v49 = vperm.slane %v322_v48, 0 }
 0x171   : > { %v327_v51 = vmul.f32 %v325_v49, %v818_v0  ;;  %v334_v52 = vmul.f32 %v325_v49, %v820_v1  ;;  %v338_v53 = vmul.f32 %v325_v49, %v822_v2  ;;  %v342_v54 = vmul.f32 %v325_v49, %v830_v6 }
 0x172   : > { %v346_v55 = vmul.f32 %v325_v49, %v832_v7  ;;  %v350_v56 = vmul.f32 %v325_v49, %v834_v8  ;;  %v354_v57 = vmul.f32 %v325_v49, %v842_v12  ;;  %v358_v0 = vmul.f32 %v325_v49, %v844_v13 }
 0x173   : > { %v331_v58 = vadd.f32 %v542_v50, %v327_v51  ;;  %v335_v59 = vadd.f32 %v542_v50, %v334_v52  ;;  %v339_v60 = vadd.f32 %v542_v50, %v338_v53  ;;  %v343_v1 = vadd.f32 %v542_v50, %v342_v54 }
 0x174   : > { %v347_v2 = vadd.f32 %v542_v50, %v346_v55  ;;  %v351_v6 = vadd.f32 %v542_v50, %v350_v56  ;;  %v355_v7 = vadd.f32 %v542_v50, %v354_v57  ;;  %v359_v8 = vadd.f32 %v542_v50, %v358_v0 }
 0x175   : > { %332 = vst [vmem:[%s205_s30] sm:$0xff] %v331_v58 }
 0x176   : > { %336 = vst [vmem:[%s205_s30 + $0x8] sm:$0xff] %v335_v59 }
 0x177   : > { %340 = vst [vmem:[%s205_s30 + $0x10] sm:$0xff] %v339_v60 }
 0x178   : > { %344 = vst [vmem:[%s205_s30 + $0x18] sm:$0xff] %v343_v1 }
 0x179   : > { %348 = vst [vmem:[%s205_s30 + $0x20] sm:$0xff] %v347_v2 }
 0x17a   : > { %352 = vst [vmem:[%s205_s30 + $0x28] sm:$0xff] %v351_v6 }
 0x17b   : > { %356 = vst [vmem:[%s205_s30 + $0x30] sm:$0xff] %v355_v7 }
 0x17c   : > { %360 = vst [vmem:[%s205_s30 + $0x38] sm:$0xff] %v359_v8 }
 0x17d   : > { %634 = shalt.err (!%p631_p8)
}
 0x17e   : > { %s685_s10 = smov 128   ;;  %s686_s6 = smov 8  }
 0x17f   : > { %484 = dma.vmem_to_hbm [thread:$0]  (%p759_p11), %s375_s4, 1024, %s377_s9, %s362_s8, %s685_s10, %s685_s10, %s686_s6  }
 0x180 PF: > { %s391_s17 = sand.u32 1, %s665_s12   ;;  %p906_p9 = scmp.ge.s32.totalorder %s677_s15, 2 }
 0x181   : > { %s392_s20 = scalar_lea.sflag [#allocation4], %s391_s17 }
 0x182   : > { %p495_p10 = pnand %p906_p9, %p763_p12 }
 0x184   : > { %p496_p1 = pneg %p495_p10 }
 0x186   : > { %660 = dma.done.wait (%p496_p1), %s392_s20, 1024  }
 0x187   : > { %662 = vsyncadd (%p496_p1), %s392_s20, 4294966272  ;;  %p17_p2 = scmp.ge.s32.totalorder %s732_s18, 4   ;;  %s907_s12 = smov %s669_s13 }
 0x188   : > { %s908_s13 = smov %s673_s14  ;;  %s909_s14 = smov %s744_s21 }
 0x189   : > { %s910_s15 = smov %s732_s18  ;;  %19 = sbr.rel (!%p17_p2) target bundleno = 6 (0x6), region = 81 }
 0x18e   :  { %398 = vsyncpa [#allocation3], 1 }
 0x18f   :  { %400 = vsyncpa [#allocation3 + $0x1], 1 }
 0x190   :  { %401 = vsyncpa [#allocation6], 1 }
 0x191   :  { %402 = vsyncpa [#allocation4], 1 }
 0x192   :  { %404 = vsyncpa [#allocation4 + $0x1], 1 }

</bundles_post_ra>
